<compile_context>
chip_gen: v6e
topology: v6e:2x2x1
jax: 0.10.0
libtpu: 0.0.40
codegen_flags: <defaults>
</compile_context>

<pallas_src>
import jax
import jax.numpy as jnp
from jax.experimental import pallas as pl
from jax.experimental.pallas import tpu as pltpu


def _copy_kernel(x_ref, o_ref):
    # Pass-through of one (row_tile, lane_width) lane-dense slab.
    o_ref[...] = x_ref[...]


_TARGET_BLOCK_BYTES = 2 * 1024 * 1024  # ~2 MiB/block; 2 bufs in + 2 bufs out ~= 8 MiB VMEM


def _sublane_pack(dtype) -> int:
    itemsize = jnp.dtype(dtype).itemsize
    return {4: 8, 2: 16, 1: 32}.get(itemsize, 8)


def _materialized_copy(attn_weights: jax.Array) -> jax.Array:
    """Tiled Pallas copy of attn_weights into a fresh buffer (lane-dense 2D tiling)."""
    orig_shape = attn_weights.shape
    dtype = attn_weights.dtype
    total = attn_weights.size
    last = orig_shape[-1] if orig_shape else 1

    # Pick a lane-dense last dimension (multiple of 128) for the flattened view.
    if last % 128 == 0:
        lane_width = last
    elif total % 128 == 0:
        lane_width = 128
    else:
        # No lane-dense 2D view exists; single full-array block (tiny/odd shapes only).
        return pl.pallas_call(
            _copy_kernel,
            out_shape=jax.ShapeDtypeStruct(orig_shape, dtype),
        )(attn_weights)

    rows = total // lane_width
    x2d = attn_weights.reshape(rows, lane_width)

    # Row tile: ~_TARGET_BLOCK_BYTES per block, sublane-pack aligned, and when the
    # tensor is big enough, capped so the grid has >= 2 steps (feeds both v7x TCs).
    pack = _sublane_pack(dtype)
    bytes_per_row = lane_width * jnp.dtype(dtype).itemsize
    row_tile = max(1, _TARGET_BLOCK_BYTES // bytes_per_row)
    row_tile = max(pack, (row_tile // pack) * pack)
    if rows >= 2 * pack and row_tile > rows // 2:
        row_tile = max(pack, ((rows // 2) // pack) * pack)
    row_tile = min(row_tile, rows)

    grid = (pl.cdiv(rows, row_tile),)

    out2d = pl.pallas_call(
        _copy_kernel,
        out_shape=jax.ShapeDtypeStruct((rows, lane_width), dtype),
        grid=grid,
        in_specs=[pl.BlockSpec((row_tile, lane_width), lambda i: (i, 0))],
        out_specs=pl.BlockSpec((row_tile, lane_width), lambda i: (i, 0)),
        compiler_params=pltpu.CompilerParams(
            dimension_semantics=("parallel",),
        ),
    )(x2d)

    return out2d.reshape(orig_shape)


def attention_adapter_base_forward(
    attn_weights: jax.Array,
    use_flag: bool = True,          # matches PyTorch __init__ default
    materialize: bool = False,
) -> jax.Array:
    """Pallas implementation of AttentionAdapterBase.forward.

    attn_weights: (B, H, S_q, S_k) attention-weights tensor.
    use_flag=True  -> abstract `_forward` (NotImplementedError, as in PyTorch).
    use_flag=False -> identity pass-through:
        materialize=False: zero-cost (no kernel launch, no HBM traffic).
        materialize=True : tiled Pallas streaming copy into a fresh buffer.
    """
    if use_flag:
        raise NotImplementedError("AttentionAdapterBase._forward is abstract")

    if not materialize:
        return attn_weights

    return _materialized_copy(attn_weights)


if __name__ == "__main__":
    key = jax.random.PRNGKey(0)
    B, H, Sq, Sk = 2, 4, 8, 128  # (batch, heads, q_len, k_len)
    attn_weights = jax.random.normal(key, (B, H, Sq, Sk), dtype=jnp.float32)

    # use_flag=True (PyTorch default) -> abstract _forward must raise.
    raised = False
    try:
        attention_adapter_base_forward(attn_weights, use_flag=True)
    except NotImplementedError:
        raised = True
    assert raised, "use_flag=True must raise NotImplementedError (abstract _forward)"

    # use_flag=False: identity pass-through, no kernel launch.
    out_fast = attention_adapter_base_forward(attn_weights, use_flag=False)
    out_fast = jax.block_until_ready(out_fast)
    assert out_fast.shape == attn_weights.shape
    assert out_fast.dtype == attn_weights.dtype
    assert bool(jnp.array_equal(out_fast, attn_weights)), "fast pass-through mismatch"

    # Materialized path: exercise the tiled Pallas copy kernel on TPU.
    out_copy = attention_adapter_base_forward(
        attn_weights, use_flag=False, materialize=True
    )
    out_copy = jax.block_until_ready(out_copy)
    assert out_copy.shape == attn_weights.shape
    assert out_copy.dtype == attn_weights.dtype
    assert bool(jnp.array_equal(out_copy, attn_weights)), "materialized pass-through mismatch"

    print("KERNEL_OK")
</pallas_src>

<mosaic_0001>
module attributes {stable_mosaic.version = 11 : i64} {
  func.func @_copy_kernel(%arg0: i32, %arg1: memref<32x128xf32, #tpu.memory_space<vmem>>, %arg2: memref<32x128xf32, #tpu.memory_space<vmem>>) attributes {dimension_semantics = [#tpu.dimension_semantics<parallel>], iteration_bounds = array<i64: 2>, scalar_prefetch = 0 : i64, scratch_operands = 0 : i64, tpu.core_type = #tpu.core_type<tc>, window_params = [{transform_indices = @transform_0, window_bounds = array<i64: 32, 128>}, {transform_indices = @transform_1, window_bounds = array<i64: 32, 128>}]} {
    %c0 = arith.constant 0 : index
    %c0_0 = arith.constant 0 : index
    %0 = vector.load %arg1[%c0, %c0_0] : memref<32x128xf32, #tpu.memory_space<vmem>>, vector<32x128xf32>
    %c0_1 = arith.constant 0 : index
    %c0_2 = arith.constant 0 : index
    %1 = vector.load %arg2[%c0_1, %c0_2] : memref<32x128xf32, #tpu.memory_space<vmem>>, vector<32x128xf32>
    tpu.vector_store %arg2[%c0_1, %c0_2], %0 {strides = array<i32>} : memref<32x128xf32, #tpu.memory_space<vmem>>, vector<32x128xf32>,
    return
  }
  func.func @transform_0(%arg0: i32) -> (i32, i32) {
    %c0_i32 = arith.constant 0 : i32
    %c0_i32_0 = arith.constant 0 : i32
    return %arg0, %c0_i32 : i32, i32
  }
  func.func @transform_1(%arg0: i32) -> (i32, i32) {
    %c0_i32 = arith.constant 0 : i32
    %c0_i32_0 = arith.constant 0 : i32
    return %arg0, %c0_i32 : i32, i32
  }
}

</mosaic_0001>

<bundles_post_ra>
// kernel: tpu_custom_call.1
= control target key start
LH: loop header
LB: loop body
LE: loop exit
PB: predicated region body
PF: predicated region fallthrough
CT: control target
= control target key end

     0   :  { %6 = vsyncpa [#allocation3], 0  ;;  %s562_s0 = inlined_call_operand.hbm [shape: f32[64,128], index: 0, kind: input, shape index: {}]   ;;  %s563_s1 = inlined_call_operand.hbm [shape: f32[64,128], index: 1, kind: output, shape index: {}]  }
   0x1   :  { %8 = vsyncpa [#allocation3 + $0x1], 0 }
   0x2   :  { %9 = vsyncpa [#allocation4], 0 }
   0x3   :  { %11 = vsyncpa [#allocation4 + $0x1], 0  ;;  %s408_s6 = smov 0   ;;  %s410_s7 = smov 0  }
   0x4   :  { %s412_s8 = smov 0   ;;  %s414_s9 = smov 0  }
   0x5 LB: > { %s429_s10 = sadd.s32 4294967295, %s390_s9   ;;  %s232_s11 = sadd.s32 4294967294, %s390_s9   ;;  %s390_s9 = sphi %s414_s9, %s578_s9   ;;  %s386_s8 = sphi %s412_s8, %s577_s8   ;;  %s382_s7 = sphi %s410_s7, %s576_s7   ;;  %s378_s6 = sphi %s408_s6, %s575_s6  }
   0x6   : > { %s433_s12 = sadd.s32 1, %s390_s9   ;;  %s24_s13 = sadd.s32 1, %s386_s8 }
   0x7   : > { %s21_s14 = ssub.s32 %s390_s9, %s433_s12  ;;  %p31_p0 = scmp.ne.s32.totalorder %s386_s8, %s382_s7 }
   0x8   : > { %p22_p1 = scmp.eq.s32.totalorder %s21_s14, 0  ;;  %p32_p2 = scmp.eq.s32.totalorder %s390_s9, 0 }
   0x9   : > { %p37_p3 = scmp.ne.s32.totalorder %s382_s7, %s378_s6  ;;  %p38_p4 = scmp.eq.s32.totalorder %s429_s10, 0 }
   0xa   : > { %s445_s15 = scalar_select %p22_p1, %s386_s8, %s24_s13  }
   0xb   : > { %p447_p5 = por %p32_p2, %p31_p0  ;;  %p451_p6 = por %p38_p4, %p37_p3 }
   0xc   : > { %p61_p7 = scmp.eq.s32.totalorder %s429_s10, 1  ;;  %p67_p8 = scmp.eq.s32.totalorder %s232_s11, 1 }
   0xd   : > { %s567_s17 = scalar_select %p451_p6, 1, 0 }
   0xe   : > { %p260_p10 = scmp.lt.s32.totalorder %s390_s9, 2  ;;  %p458_p11 = por %p61_p7, %p31_p0 }
   0xf   : > { %p462_p12 = por %p67_p8, %p37_p3  ;;  %s87_s20 = sand.u32 1, %s386_s8  }
  0x10   : > { %s568_s18 = scalar_select %p458_p11, 1, 0 }
  0x11   : > { %s569_s19 = scalar_select %p462_p12, 1, 0 }
  0x12   : > { %s246_s21 = sshll.u32 %s390_s9, 9  ;;  %s235_s22 = sshll.u32 %s87_s20, 5 }
  0x13   : > { %s471_s25 = scalar_lea.hbm %s562_s0, %s246_s21  ;;  %s91_s26 = scalar_lea.vmem [#allocation2], %s235_s22 }
  0x14   : > { %s98_s27 = sshll.u32 %s91_s26, 4  ;;  %p475_p13 = pnand %p260_p10, %p447_p5  ;;  %s479_s27 = int_to_ptr.vmem [resolvable:$true] %s98_s27 }
  0x15   : > { %s481_s29 = scalar_lea.sflag [#allocation3], %s87_s20  ;;  %s298_s30 = scalar_lea.hbm %s471_s25, 512 }
  0x16   : > { %p299_p0 = scmp.ne.s32.totalorder %s471_s25, %s298_s30  ;;  %p300_p1 = pneg %p475_p13 }
  0x17   : > { %s303_s4 = scalar_lea.hbm %s562_s0, 1024  ;;  %p304_p4 = scmp.lt.s32.totalorder %s471_s25, %s562_s0 }
  0x18   : > { %p301_p2 = pnand %p300_p1, %p299_p0  ;;  %p305_p5 = scmp.lt.s32.totalorder %s303_s4, %s298_s30 }
  0x1a   : > { %p302_p3 = pneg %p301_p2  ;;  %p306_p7 = por %p305_p5, %p304_p4 }
  0x1c   : > { %p307_p8 = pnand %p306_p7, %p302_p3 }
  0x1e   : > { %310 = shalt.err (!%p307_p8)
}
  0x1f   : > { %s311_s13 = scalar_lea.vmem %s479_s27, 512  ;;  %s392_s14 = smov [#allocation2]  }
  0x20   : > { %p312_p10 = scmp.ne.s32.totalorder %s479_s27, %s311_s13  ;;  %s316_s16 = sshll.u32 %s392_s14, 4  ;;  %s317_s16 = int_to_ptr.vmem [resolvable:$false] %s316_s16 }
  0x21   : > { %s318_s20 = scalar_lea.vmem %s317_s16, 1024  ;;  %p319_p2 = scmp.lt.s32.totalorder %s479_s27, %s317_s16 }
  0x22   : > { %p314_p9 = pnand %p312_p10, %p300_p1  ;;  %p320_p12 = scmp.lt.s32.totalorder %s318_s20, %s311_s13 }
  0x24   : > { %p315_p0 = pneg %p314_p9  ;;  %p321_p11 = por %p320_p12, %p319_p2 }
  0x26   : > { %p322_p6 = pnand %p321_p11, %p315_p0 }
  0x28   : > { %325 = shalt.err (!%p322_p6)
}
  0x29   : > { %s393_s21 = smov 128   ;;  %s394_s22 = smov 8  }
  0x2a   : > { %255 = dma.hbm_to_vmem [thread:$0]  (!%p475_p13), %s471_s25, 512, %s479_s27, %s481_s29, %s393_s21, %s393_s21, %s394_s22  }
  0x2b   : > { %p238_p9 = scmp.ge.s32.totalorder %s390_s9, 1  ;;  %p106_p1 = scmp.lt.s32.totalorder %s390_s9, 3 }
  0x2d   : > { %p107_p3 = pnand %p238_p9, %p106_p1 }
  0x2e   : > { %s505_s23 = sand.u32 (!%p107_p3), 1, %s382_s7   ;;  %p571_p6 = scmp.ne.s32.totalorder (!%p107_p3), %s567_s17, 0 }
  0x2f   : > { %110 = sbr.rel (%p107_p3) target bundleno = 79 (0x4f), region = 24  ;;  %s239_s24 = sshll.u32 (!%p107_p3), %s505_s23, 5 }
  0x30   : > { %s113_s26 = scalar_lea.sflag (!%p107_p3), [#allocation3], %s505_s23  ;;  %s116_s30 = scalar_lea.vmem (!%p107_p3), [#allocation2], %s239_s24 }
  0x34   : > { %369 = dma.done.wait (%p571_p6), %s113_s26, 512  }
  0x35   : > { %371 = vsyncadd (%p571_p6), %s113_s26, 4294966784  ;;  %s134_s25 = scalar_lea.vmem [#allocation5], %s239_s24  ;;  %s247_s28 = sshll.u32 %s429_s10, 9  ;;  %v137_v0 = vld [vmem:[%s116_s30] sm:$0xff]  ;;  %v138_v1 = vld [vmem:[%s116_s30 + $0x8] sm:$0xff] }
  0x36   : > { %s159_s27 = sshll.u32 %s134_s25, 4  ;;  %s519_s3 = scalar_lea.hbm %s563_s1, %s247_s28  ;;  %v139_v2 = vld [vmem:[%s116_s30 + $0x10] sm:$0xff]  ;;  %141 = vst [vmem:[%s134_s25] sm:$0xff] %v137_v0  ;;  %142 = vst [vmem:[%s134_s25 + $0x8] sm:$0xff] %v138_v1  ;;  %v140_v3 = vld [vmem:[%s116_s30 + $0x18] sm:$0xff]  ;;  %s514_s27 = int_to_ptr.vmem [resolvable:$true] %s159_s27 }
  0x37   : > { %143 = vst [vmem:[%s134_s25 + $0x10] sm:$0xff] %v139_v2  ;;  %144 = vst [vmem:[%s134_s25 + $0x18] sm:$0xff] %v140_v3  ;;  %s146_s17 = scalar_lea.sflag [#allocation4], %s505_s23  ;;  %s326_s10 = scalar_lea.vmem %s514_s27, 512 }
  0x38   : > { %p327_p11 = scmp.ne.s32.totalorder %s514_s27, %s326_s10  ;;  %p572_p12 = scmp.ne.s32.totalorder %s568_s18, 0 }
  0x39   : > { %s395_s4 = smov [#allocation5]  }
  0x3a   : > { %p328_p13 = pnand %p327_p11, %p572_p12  ;;  %s330_s5 = sshll.u32 %s395_s4, 4  ;;  %s331_s5 = int_to_ptr.vmem [resolvable:$false] %s330_s5 }
  0x3b   : > { %s332_s11 = scalar_lea.vmem %s331_s5, 1024  ;;  %p333_p5 = scmp.lt.s32.totalorder %s514_s27, %s331_s5 }
  0x3c   : > { %p329_p4 = pneg %p328_p13  ;;  %p334_p7 = scmp.lt.s32.totalorder %s332_s11, %s326_s10 }
  0x3e   : > { %p335_p8 = por %p334_p7, %p333_p5 }
  0x40   : > { %p336_p10 = pnand %p335_p8, %p329_p4 }
  0x42   : > { %339 = shalt.err (!%p336_p10)
}
  0x43   : > { %s340_s13 = scalar_lea.hbm %s519_s3, 512  ;;  %s344_s20 = scalar_lea.hbm %s563_s1, 1024 }
  0x44   : > { %p341_p0 = scmp.ne.s32.totalorder %s519_s3, %s340_s13  ;;  %p345_p1 = scmp.lt.s32.totalorder %s519_s3, %s563_s1 }
  0x45   : > { %p346_p3 = scmp.lt.s32.totalorder %s344_s20, %s340_s13 }
  0x46   : > { %p342_p2 = pnand %p341_p0, %p572_p12 }
  0x47   : > { %p347_p6 = por %p346_p3, %p345_p1 }
  0x48   : > { %p343_p9 = pneg %p342_p2 }
  0x4a   : > { %p348_p11 = pnand %p347_p6, %p343_p9 }
  0x4c   : > { %351 = shalt.err (!%p348_p11)
}
  0x4d   : > { %s396_s24 = smov 128   ;;  %s397_s26 = smov 8  }
  0x4e   : > { %250 = dma.vmem_to_hbm [thread:$0]  (%p572_p12), %s514_s27, 512, %s519_s3, %s146_s17, %s396_s24, %s396_s24, %s397_s26  }
  0x4f PF: > { %s174_s30 = sand.u32 1, %s378_s6   ;;  %p573_p13 = scmp.ne.s32.totalorder %s569_s19, 0 }
  0x50   : > { %p574_p4 = scmp.ge.s32.totalorder %s390_s9, 2  ;;  %s175_s25 = scalar_lea.sflag [#allocation4], %s174_s30 }
  0x52   : > { %p257_p5 = pnand %p574_p4, %p573_p13 }
  0x54   : > { %p258_p7 = pneg %p257_p5 }
  0x56   : > { %373 = dma.done.wait (%p258_p7), %s175_s25, 512  }
  0x57   : > { %375 = vsyncadd (%p258_p7), %s175_s25, 4294966784  ;;  %p14_p8 = scmp.ge.s32.totalorder %s433_s12, 4   ;;  %s575_s6 = smov %s382_s7 }
  0x58   : > { %s576_s7 = smov %s386_s8  ;;  %s577_s8 = smov %s445_s15 }
  0x59   : > { %s578_s9 = smov %s433_s12  ;;  %16 = sbr.rel (!%p14_p8) target bundleno = 5 (0x5), region = 69 }
  0x5e   :  { %180 = vsyncpa [#allocation3], 1 }
  0x5f   :  { %182 = vsyncpa [#allocation3 + $0x1], 1 }
  0x60   :  { %183 = vsyncpa [#allocation4], 1 }
  0x61   :  { %185 = vsyncpa [#allocation4 + $0x1], 1 }

</bundles_post_ra>
